<compile_context>
chip_gen: v6e
topology: v6e:2x2x1
jax: 0.10.0
libtpu: 0.0.40
codegen_flags: <defaults>
</compile_context>

<pallas_src>
import functools

import jax
import jax.numpy as jnp
from jax.experimental import pallas as pl
from jax.experimental.pallas import tpu as pltpu


# Explicit VMEM limit: above the 16/32 MiB scoped defaults, comfortably below
# v7x's 64 MiB physical VMEM.
_VMEM_LIMIT_BYTES = 48 * 1024 * 1024
# Budget used when choosing the attention query tile (conservative, leaves
# headroom under _VMEM_LIMIT_BYTES for compiler scratch / pipeline buffers).
_ATTN_VMEM_BUDGET = 20 * 1024 * 1024


# ----------------------------------------------------------------------------
# Tiling helpers
# ----------------------------------------------------------------------------
def _pick_tile(dim, target, align=8):
    """Largest tile <= target that divides `dim` and is `align`-aligned.

    Falls back to the full dimension (always a legal block shape)."""
    if dim <= target:
        return dim
    for a in (align, 8):
        t = (target // a) * a
        while t >= a:
            if dim % t == 0:
                return t
            t -= a
    return dim


# ----------------------------------------------------------------------------
# Kernel 1: tiled dense linear layer  y = x @ W_t + b  (in_proj & out_proj)
# ----------------------------------------------------------------------------
def _linear_kernel(x_ref, w_ref, b_ref, o_ref, acc_ref):
    k = pl.program_id(2)

    @pl.when(k == 0)
    def _init():
        # Initialize the accumulator with the broadcast bias: saves the
        # finalize-path VPU add.
        acc_ref[...] = jnp.broadcast_to(
            b_ref[...].astype(jnp.float32), acc_ref.shape)

    acc_ref[...] += jnp.dot(
        x_ref[...], w_ref[...], preferred_element_type=jnp.float32)

    @pl.when(k == pl.num_programs(2) - 1)
    def _finalize():
        o_ref[...] = acc_ref[...].astype(o_ref.dtype)


def pallas_linear(x, w_t, b, out_dtype,
                  tm_target=512, tn_target=512, tk_target=1024):
    """x: (M, K) bf16, w_t: (K, N) bf16, b: (N,) f32 -> (M, N) out_dtype."""
    M, K = x.shape
    N = w_t.shape[1]
    tm = _pick_tile(M, tm_target, 16)     # 16-aligned sublanes for bf16 packing
    tn = _pick_tile(N, tn_target, 128)    # lane-dense
    tk = _pick_tile(K, tk_target, 128)
    grid = (M // tm, N // tn, K // tk)
    out_bytes = jnp.dtype(out_dtype).itemsize
    cost = pl.CostEstimate(
        flops=2 * M * N * K,
        transcendentals=0,
        bytes_accessed=2 * M * K + 2 * K * N + out_bytes * M * N + 4 * N)
    return pl.pallas_call(
        _linear_kernel,
        out_shape=jax.ShapeDtypeStruct((M, N), out_dtype),
        grid=grid,
        in_specs=[
            pl.BlockSpec((tm, tk), lambda i, j, k: (i, k)),
            pl.BlockSpec((tk, tn), lambda i, j, k: (k, j)),
            pl.BlockSpec((1, tn), lambda i, j, k: (0, j)),
        ],
        out_specs=pl.BlockSpec((tm, tn), lambda i, j, k: (i, j)),
        scratch_shapes=[pltpu.VMEM((tm, tn), jnp.float32)],
        compiler_params=pltpu.CompilerParams(
            dimension_semantics=("parallel", "parallel", "arbitrary"),
            vmem_limit_bytes=_VMEM_LIMIT_BYTES,
        ),
        cost_estimate=cost,
    )(x, w_t, b.reshape(1, N))


# ----------------------------------------------------------------------------
# Kernel 2: all-heads scaled-dot-product attention + softmax for one batch
# element / query tile.  Grid = (batch, query-tile); the query-tile axis is
# innermost so the (S, E) K/V blocks (index_map independent of it) are DMA'd
# once per batch element and stay resident across all query tiles.
# ----------------------------------------------------------------------------
def _attn_kernel(q_ref, k_ref, v_ref, o_ref, w_ref, *, num_heads, head_dim):
    q = q_ref[...]                        # (tq, E) bf16, q pre-scaled
    k = k_ref[...]                        # (S,  E) bf16
    v = v_ref[...]                        # (S,  E) bf16

    contract_last = (((1,), (1,)), ((), ()))   # q_h (tq,Dh) . k_h (S,Dh) -> (tq,S)
    outs = []
    w_sum = None
    for h in range(num_heads):            # static unroll over heads
        sl = slice(h * head_dim, (h + 1) * head_dim)
        s = jax.lax.dot_general(q[:, sl], k[:, sl], contract_last,
                                preferred_element_type=jnp.float32)  # (tq, S)
        m = jnp.max(s, axis=-1, keepdims=True)
        p = jnp.exp(s - m)
        denom = jnp.sum(p, axis=-1, keepdims=True)
        # Exact normalization: these probabilities also feed the returned
        # averaged attention weights.
        p = p * (1.0 / denom)
        w_sum = p if w_sum is None else w_sum + p
        o_h = jnp.dot(p.astype(v.dtype), v[:, sl],
                      preferred_element_type=jnp.float32)            # (tq, Dh)
        outs.append(o_h)

    # Merged-head, lane-dense (tq, E) store: out_proj consumes this layout
    # directly (no wrapper transpose).
    o_ref[...] = jnp.concatenate(outs, axis=-1).astype(o_ref.dtype)
    w_ref[0] = (w_sum * (1.0 / num_heads)).astype(w_ref.dtype)


def _attn_query_tile(T, S, E, B, budget_bytes=_ATTN_VMEM_BUDGET):
    """VMEM-budgeted query tile (counts double-buffered blocks + f32 temps)."""
    kv_fixed = 2 * (2 * S * E * 2)          # K and V, double-buffered, bf16
    per_row = 12 * E + 20 * S               # q/o blocks, weights block, f32 temps
    avail = budget_bytes - kv_fixed
    cap = max(16, avail // per_row) if avail > 0 else 16
    cap = min(int(cap), 512)
    tq = _pick_tile(T, cap, 16)
    # Keep both v7x TensorCores busy when batch == 1.
    if B == 1 and T // tq < 2:
        for t2 in range(tq // 2, 7, -1):
            if T % t2 == 0 and t2 % 8 == 0:
                tq = t2
                break
    return tq


def pallas_attention_from_qkv(qkv_tb, *, seq_len, batch, embed_dim, num_heads,
                              out_dtype=jnp.bfloat16):
    """qkv_tb: (T, B*3E) bf16 view of the fused in_proj output (q pre-scaled).

    Returns:
      attn_tb:      (T, B*E) out_dtype  (merged heads, ready for out_proj)
      attn_weights: (B, T, S) float32   (softmax weights averaged over heads)
    """
    T, B, E, H = seq_len, batch, embed_dim, num_heads
    S = T                                  # self-attention path
    if E % 128 != 0:
        # TODO(synk): lane-unaligned embed_dim needs a padded / 3-D-block path.
        raise NotImplementedError("embed_dim must be a multiple of 128")
    Dh = E // H
    tq = _attn_query_tile(T, S, E, B)
    grid = (B, T // tq)                    # query-tile innermost -> K/V resident

    kernel = functools.partial(_attn_kernel, num_heads=H, head_dim=Dh)
    cost = pl.CostEstimate(
        flops=4 * B * T * S * E,
        transcendentals=B * H * T * S,
        bytes_accessed=2 * B * T * 3 * E + 2 * B * T * E + 4 * B * T * S)

    return pl.pallas_call(
        kernel,
        out_shape=(
            jax.ShapeDtypeStruct((T, B * E), out_dtype),
            jax.ShapeDtypeStruct((B, T, S), jnp.float32),
        ),
        grid=grid,
        in_specs=[
            # (T, B*3E): column block-index 3b -> q, 3b+1 -> k, 3b+2 -> v
            pl.BlockSpec((tq, E), lambda b, ti: (ti, 3 * b)),
            pl.BlockSpec((S, E), lambda b, ti: (0, 3 * b + 1)),
            pl.BlockSpec((S, E), lambda b, ti: (0, 3 * b + 2)),
        ],
        out_specs=(
            pl.BlockSpec((tq, E), lambda b, ti: (ti, b)),       # (T, B*E)
            pl.BlockSpec((1, tq, S), lambda b, ti: (b, ti, 0)),  # (B, T, S)
        ),
        compiler_params=pltpu.CompilerParams(
            dimension_semantics=("parallel", "parallel"),
            vmem_limit_bytes=_VMEM_LIMIT_BYTES,
        ),
        cost_estimate=cost,
    )(qkv_tb, qkv_tb, qkv_tb)


# ----------------------------------------------------------------------------
# Module-equivalent wrapper
# ----------------------------------------------------------------------------
def xavier_uniform(key, shape):
    fan_out, fan_in = shape
    a = (6.0 / (fan_in + fan_out)) ** 0.5
    return jax.random.uniform(key, shape, jnp.float32, minval=-a, maxval=a)


def make_params(key, embed_dim):
    k1, k2 = jax.random.split(key)
    return {
        # same shapes as the PyTorch module's parameters
        "in_proj_weight": xavier_uniform(k1, (3 * embed_dim, embed_dim)),
        "in_proj_bias": jnp.zeros((3 * embed_dim,), jnp.float32),
        "out_proj_weight": xavier_uniform(k2, (embed_dim, embed_dim)),
        "out_proj_bias": jnp.zeros((embed_dim,), jnp.float32),
    }


def multihead_attention_forward(params, query, key, value, num_heads,
                                compute_dtype=jnp.bfloat16):
    """Self-attention forward pass (qkv_same path, no masks, eval/dropout=0).

    query/key/value: (T, B, E). Returns (attn (T,B,E) f32, weights (B,T,S) f32).
    """
    # TODO(synk): incremental_state / key_padding_mask / mask_future_timesteps
    #             / cross-attention (kv_same) branches not covered; `key` and
    #             `value` are assumed identical to `query` (qkv_same path).
    del key, value
    T, B, E = query.shape
    H = num_heads
    assert E % H == 0
    Dh = E // H
    scaling = Dh ** (-0.5)

    # ---- fold the q-scaling into the in-projection (trace time, free) ------
    scale_vec = jnp.concatenate(
        [jnp.full((E,), scaling, jnp.float32), jnp.ones((2 * E,), jnp.float32)]
    )
    w_in = params["in_proj_weight"] * scale_vec[:, None]       # (3E, E) f32
    b_in = params["in_proj_bias"] * scale_vec                  # (3E,)  f32

    # ---- in_proj (single fused qkv projection, tiled Pallas matmul) --------
    x2d = query.reshape(T * B, E).astype(compute_dtype)
    qkv = pallas_linear(x2d, w_in.T.astype(compute_dtype), b_in,
                        out_dtype=compute_dtype)               # (T*B, 3E)

    # Free reshape to (T, B*3E): per-(t, b) columns are [q | k | v], each E wide.
    qkv_tb = qkv.reshape(T, B * 3 * E)

    # ---- all-heads attention + softmax (Pallas), lane-dense in/out ---------
    attn_tb, attn_weights = pallas_attention_from_qkv(
        qkv_tb, seq_len=T, batch=B, embed_dim=E, num_heads=H,
        out_dtype=compute_dtype)                               # (T, B*E), (B,T,S)

    # ---- out_proj (merged-head layout consumed directly, free reshape) -----
    attn2d = attn_tb.reshape(T * B, E)                         # (T*B, E) bf16
    out = pallas_linear(attn2d,
                        params["out_proj_weight"].T.astype(compute_dtype),
                        params["out_proj_bias"],
                        out_dtype=jnp.float32)
    out = out.reshape(T, B, E)

    # attn_weights already averaged over heads in-kernel: (B, T, S) f32
    return out, attn_weights


# ----------------------------------------------------------------------------
# Pure-JAX f32 reference (PyTorch semantics) for sanity check
# ----------------------------------------------------------------------------
def reference_forward(params, query, num_heads):
    T, B, E = query.shape
    H = num_heads
    Dh = E // H
    scaling = Dh ** (-0.5)
    qkv = query.reshape(T * B, E) @ params["in_proj_weight"].T + params["in_proj_bias"]
    q, k, v = jnp.split(qkv, 3, axis=-1)
    q = (q * scaling).reshape(T, B * H, Dh).transpose(1, 0, 2)
    k = k.reshape(T, B * H, Dh).transpose(1, 0, 2)
    v = v.reshape(T, B * H, Dh).transpose(1, 0, 2)
    s = jnp.einsum("btd,bsd->bts", q, k)
    p = jax.nn.softmax(s, axis=-1)
    o = jnp.einsum("bts,bsd->btd", p, v)
    o = o.transpose(1, 0, 2).reshape(T * B, E)
    o = o @ params["out_proj_weight"].T + params["out_proj_bias"]
    o = o.reshape(T, B, E)
    w = p.reshape(B, H, T, T).sum(axis=1) / H
    return o, w


if __name__ == "__main__":
    embed_dim = 128      # multiple of 128 -> lane-dense blocks
    num_heads = 4
    T, B = 8, 2

    root = jax.random.PRNGKey(0)
    kp, kx = jax.random.split(root)
    params = make_params(kp, embed_dim)

    # (Time, Batch, Channel) input; self-attention -> q = k = v
    x = jax.random.normal(kx, (T, B, embed_dim), jnp.float32)

    fwd = jax.jit(functools.partial(multihead_attention_forward,
                                    num_heads=num_heads))
    attn, attn_weights = fwd(params, x, x, x)
    attn = jax.block_until_ready(attn)
    attn_weights = jax.block_until_ready(attn_weights)

    ref_attn, ref_w = reference_forward(params, x, num_heads)

    assert attn.shape == (T, B, embed_dim)
    assert attn_weights.shape == (B, T, T)
    # bf16 matmul inputs vs f32 reference -> loose (but bug-catching) tolerance
    assert jnp.allclose(attn, ref_attn, atol=1e-1, rtol=5e-2), (
        float(jnp.max(jnp.abs(attn - ref_attn))))
    assert jnp.allclose(attn_weights, ref_w, atol=3e-2, rtol=3e-2), (
        float(jnp.max(jnp.abs(attn_weights - ref_w))))

    print("KERNEL_OK")
</pallas_src>

<mosaic_0001>
module attributes {stable_mosaic.version = 11 : i64} {
  func.func @_linear_kernel(%arg0: i32, %arg1: i32, %arg2: i32, %arg3: memref<16x128xbf16, #tpu.memory_space<vmem>>, %arg4: memref<128x384xbf16, #tpu.memory_space<vmem>>, %arg5: memref<1x384xf32, #tpu.memory_space<vmem>>, %arg6: memref<16x384xbf16, #tpu.memory_space<vmem>>, %arg7: memref<16x384xf32, #tpu.memory_space<vmem>>) attributes {dimension_semantics = [#tpu.dimension_semantics<parallel>, #tpu.dimension_semantics<parallel>, #tpu.dimension_semantics<arbitrary>], iteration_bounds = array<i64: 1, 1, 1>, scalar_prefetch = 0 : i64, scratch_operands = 1 : i64, tpu.core_type = #tpu.core_type<tc>, window_params = [{transform_indices = @transform_0, window_bounds = array<i64: 16, 128>}, {transform_indices = @transform_1, window_bounds = array<i64: 128, 384>}, {transform_indices = @transform_2, window_bounds = array<i64: 1, 384>}, {transform_indices = @transform_3, window_bounds = array<i64: 16, 384>}]} {
    %c0_i32 = arith.constant 0 : i32
    %0 = arith.cmpi eq, %arg2, %c0_i32 : i32
    %1 = arith.extui %0 : i1 to i32
    %c0_i32_0 = arith.constant 0 : i32
    %2 = arith.cmpi ne, %1, %c0_i32_0 : i32
    scf.if %2 {
      %c0_10 = arith.constant 0 : index
      %c0_11 = arith.constant 0 : index
      %12 = vector.load %arg5[%c0_10, %c0_11] : memref<1x384xf32, #tpu.memory_space<vmem>>, vector<1x384xf32>
      %13 = vector.shape_cast %12 : vector<1x384xf32> to vector<1x384xf32>
      %14 = vector.broadcast %13 : vector<1x384xf32> to vector<16x384xf32>
      %c0_12 = arith.constant 0 : index
      %c0_13 = arith.constant 0 : index
      %15 = vector.load %arg7[%c0_12, %c0_13] : memref<16x384xf32, #tpu.memory_space<vmem>>, vector<16x384xf32>
      tpu.vector_store %arg7[%c0_12, %c0_13], %14 {strides = array<i32>} : memref<16x384xf32, #tpu.memory_space<vmem>>, vector<16x384xf32>,
    } else {
    }
    %c0 = arith.constant 0 : index
    %c0_1 = arith.constant 0 : index
    %3 = vector.load %arg7[%c0, %c0_1] : memref<16x384xf32, #tpu.memory_space<vmem>>, vector<16x384xf32>
    %c0_2 = arith.constant 0 : index
    %c0_3 = arith.constant 0 : index
    %4 = vector.load %arg3[%c0_2, %c0_3] : memref<16x128xbf16, #tpu.memory_space<vmem>>, vector<16x128xbf16>
    %c0_4 = arith.constant 0 : index
    %c0_5 = arith.constant 0 : index
    %5 = vector.load %arg4[%c0_4, %c0_5] : memref<128x384xbf16, #tpu.memory_space<vmem>>, vector<128x384xbf16>
    %cst = arith.constant dense<0.000000e+00> : vector<16x384xf32>
    %6 = tpu.matmul %4, %5, %cst {dimension_numbers = #tpu.dot_dimension_numbers<[1], [0], [0], [1], [0, 0, 1, 1], [], []>} : vector<16x128xbf16>, vector<128x384xbf16>, vector<16x384xf32> -> vector<16x384xf32>
    %7 = arith.addf %3, %6 : vector<16x384xf32>
    %c0_6 = arith.constant 0 : index
    %c0_7 = arith.constant 0 : index
    %8 = vector.load %arg7[%c0_6, %c0_7] : memref<16x384xf32, #tpu.memory_space<vmem>>, vector<16x384xf32>
    tpu.vector_store %arg7[%c0_6, %c0_7], %7 {strides = array<i32>} : memref<16x384xf32, #tpu.memory_space<vmem>>, vector<16x384xf32>,
    %c0_i32_8 = arith.constant 0 : i32
    %9 = arith.cmpi eq, %arg2, %c0_i32_8 : i32
    %10 = arith.extui %9 : i1 to i32
    %c0_i32_9 = arith.constant 0 : i32
    %11 = arith.cmpi ne, %10, %c0_i32_9 : i32
    scf.if %11 {
      %c0_10 = arith.constant 0 : index
      %c0_11 = arith.constant 0 : index
      %12 = vector.load %arg7[%c0_10, %c0_11] : memref<16x384xf32, #tpu.memory_space<vmem>>, vector<16x384xf32>
      %13 = arith.truncf %12 : vector<16x384xf32> to vector<16x384xbf16>
      %c0_12 = arith.constant 0 : index
      %c0_13 = arith.constant 0 : index
      %14 = vector.load %arg6[%c0_12, %c0_13] : memref<16x384xbf16, #tpu.memory_space<vmem>>, vector<16x384xbf16>
      tpu.vector_store %arg6[%c0_12, %c0_13], %13 {strides = array<i32>} : memref<16x384xbf16, #tpu.memory_space<vmem>>, vector<16x384xbf16>,
    } else {
    }
    return
  }
  func.func @transform_0(%arg0: i32, %arg1: i32, %arg2: i32) -> (i32, i32) {
    %c0_i32 = arith.constant 0 : i32
    return %arg0, %arg2 : i32, i32
  }
  func.func @transform_1(%arg0: i32, %arg1: i32, %arg2: i32) -> (i32, i32) {
    %c0_i32 = arith.constant 0 : i32
    return %arg2, %arg1 : i32, i32
  }
  func.func @transform_2(%arg0: i32, %arg1: i32, %arg2: i32) -> (i32, i32) {
    %c0_i32 = arith.constant 0 : i32
    %c0_i32_0 = arith.constant 0 : i32
    return %c0_i32, %arg1 : i32, i32
  }
  func.func @transform_3(%arg0: i32, %arg1: i32, %arg2: i32) -> (i32, i32) {
    %c0_i32 = arith.constant 0 : i32
    return %arg0, %arg1 : i32, i32
  }
}

module attributes {stable_mosaic.version = 11 : i64} {
  func.func @_attn_kernel(%arg0: i32, %arg1: i32, %arg2: memref<8x128xbf16, #tpu.memory_space<vmem>>, %arg3: memref<8x128xbf16, #tpu.memory_space<vmem>>, %arg4: memref<8x128xbf16, #tpu.memory_space<vmem>>, %arg5: memref<8x128xbf16, #tpu.memory_space<vmem>>, %arg6: memref<1x8x8xf32, #tpu.memory_space<vmem>>) attributes {dimension_semantics = [#tpu.dimension_semantics<parallel>, #tpu.dimension_semantics<parallel>], iteration_bounds = array<i64: 2, 1>, scalar_prefetch = 0 : i64, scratch_operands = 0 : i64, tpu.core_type = #tpu.core_type<tc>, window_params = [{transform_indices = @transform_0, window_bounds = array<i64: 8, 128>}, {transform_indices = @transform_1, window_bounds = array<i64: 8, 128>}, {transform_indices = @transform_2, window_bounds = array<i64: 8, 128>}, {transform_indices = @transform_3, window_bounds = array<i64: 8, 128>}, {transform_indices = @transform_4, window_bounds = array<i64: 1, 8, 8>}]} {
    %c0 = arith.constant 0 : index
    %c0_0 = arith.constant 0 : index
    %0 = vector.load %arg2[%c0, %c0_0] : memref<8x128xbf16, #tpu.memory_space<vmem>>, vector<8x128xbf16>
    %c0_1 = arith.constant 0 : index
    %c0_2 = arith.constant 0 : index
    %1 = vector.load %arg3[%c0_1, %c0_2] : memref<8x128xbf16, #tpu.memory_space<vmem>>, vector<8x128xbf16>
    %c0_3 = arith.constant 0 : index
    %c0_4 = arith.constant 0 : index
    %2 = vector.load %arg4[%c0_3, %c0_4] : memref<8x128xbf16, #tpu.memory_space<vmem>>, vector<8x128xbf16>
    %3 = vector.extract_strided_slice %0 {offsets = [0, 0], sizes = [8, 32], strides = [1, 1]} : vector<8x128xbf16> to vector<8x32xbf16>
    %4 = vector.extract_strided_slice %1 {offsets = [0, 0], sizes = [8, 32], strides = [1, 1]} : vector<8x128xbf16> to vector<8x32xbf16>
    %cst = arith.constant dense<0.000000e+00> : vector<8x8xf32>
    %5 = tpu.matmul %3, %4, %cst {dimension_numbers = #tpu.dot_dimension_numbers<[1], [1], [0], [0], [0, 0, 1, 0], [], []>} : vector<8x32xbf16>, vector<8x32xbf16>, vector<8x8xf32> -> vector<8x8xf32>
    %cst_5 = arith.constant dense<0xFF800000> : vector<8xf32>
    %6 = vector.multi_reduction <maximumf>, %5, %cst_5 [1] : vector<8x8xf32> to vector<8xf32>
    %7 = vector.shape_cast %6 : vector<8xf32> to vector<8x1xf32>
    %8 = vector.broadcast %7 : vector<8x1xf32> to vector<8x8xf32>
    %9 = arith.subf %5, %8 : vector<8x8xf32>
    %10 = math.exp %9 : vector<8x8xf32>
    %cst_6 = arith.constant dense<0.000000e+00> : vector<8xf32>
    %11 = vector.multi_reduction <add>, %10, %cst_6 [1] : vector<8x8xf32> to vector<8xf32>
    %12 = vector.shape_cast %11 : vector<8xf32> to vector<8x1xf32>
    %cst_7 = arith.constant 1.000000e+00 : f32
    %13 = vector.broadcast %cst_7 : f32 to vector<8x1xf32>
    %14 = arith.divf %13, %12 : vector<8x1xf32>
    %15 = vector.broadcast %14 : vector<8x1xf32> to vector<8x8xf32>
    %16 = arith.mulf %10, %15 : vector<8x8xf32>
    %17 = arith.truncf %16 : vector<8x8xf32> to vector<8x8xbf16>
    %18 = vector.extract_strided_slice %2 {offsets = [0, 0], sizes = [8, 32], strides = [1, 1]} : vector<8x128xbf16> to vector<8x32xbf16>
    %cst_8 = arith.constant dense<0.000000e+00> : vector<8x32xf32>
    %19 = tpu.matmul %17, %18, %cst_8 {dimension_numbers = #tpu.dot_dimension_numbers<[1], [0], [0], [1], [0, 0, 1, 1], [], []>} : vector<8x8xbf16>, vector<8x32xbf16>, vector<8x32xf32> -> vector<8x32xf32>
    %20 = vector.extract_strided_slice %0 {offsets = [0, 32], sizes = [8, 32], strides = [1, 1]} : vector<8x128xbf16> to vector<8x32xbf16>
    %21 = vector.extract_strided_slice %1 {offsets = [0, 32], sizes = [8, 32], strides = [1, 1]} : vector<8x128xbf16> to vector<8x32xbf16>
    %cst_9 = arith.constant dense<0.000000e+00> : vector<8x8xf32>
    %22 = tpu.matmul %20, %21, %cst_9 {dimension_numbers = #tpu.dot_dimension_numbers<[1], [1], [0], [0], [0, 0, 1, 0], [], []>} : vector<8x32xbf16>, vector<8x32xbf16>, vector<8x8xf32> -> vector<8x8xf32>
    %cst_10 = arith.constant dense<0xFF800000> : vector<8xf32>
    %23 = vector.multi_reduction <maximumf>, %22, %cst_10 [1] : vector<8x8xf32> to vector<8xf32>
    %24 = vector.shape_cast %23 : vector<8xf32> to vector<8x1xf32>
    %25 = vector.broadcast %24 : vector<8x1xf32> to vector<8x8xf32>
    %26 = arith.subf %22, %25 : vector<8x8xf32>
    %27 = math.exp %26 : vector<8x8xf32>
    %cst_11 = arith.constant dense<0.000000e+00> : vector<8xf32>
    %28 = vector.multi_reduction <add>, %27, %cst_11 [1] : vector<8x8xf32> to vector<8xf32>
    %29 = vector.shape_cast %28 : vector<8xf32> to vector<8x1xf32>
    %cst_12 = arith.constant 1.000000e+00 : f32
    %30 = vector.broadcast %cst_12 : f32 to vector<8x1xf32>
    %31 = arith.divf %30, %29 : vector<8x1xf32>
    %32 = vector.broadcast %31 : vector<8x1xf32> to vector<8x8xf32>
    %33 = arith.mulf %27, %32 : vector<8x8xf32>
    %34 = arith.addf %16, %33 : vector<8x8xf32>
    %35 = arith.truncf %33 : vector<8x8xf32> to vector<8x8xbf16>
    %36 = vector.extract_strided_slice %2 {offsets = [0, 32], sizes = [8, 32], strides = [1, 1]} : vector<8x128xbf16> to vector<8x32xbf16>
    %cst_13 = arith.constant dense<0.000000e+00> : vector<8x32xf32>
    %37 = tpu.matmul %35, %36, %cst_13 {dimension_numbers = #tpu.dot_dimension_numbers<[1], [0], [0], [1], [0, 0, 1, 1], [], []>} : vector<8x8xbf16>, vector<8x32xbf16>, vector<8x32xf32> -> vector<8x32xf32>
    %38 = vector.extract_strided_slice %0 {offsets = [0, 64], sizes = [8, 32], strides = [1, 1]} : vector<8x128xbf16> to vector<8x32xbf16>
    %39 = vector.extract_strided_slice %1 {offsets = [0, 64], sizes = [8, 32], strides = [1, 1]} : vector<8x128xbf16> to vector<8x32xbf16>
    %cst_14 = arith.constant dense<0.000000e+00> : vector<8x8xf32>
    %40 = tpu.matmul %38, %39, %cst_14 {dimension_numbers = #tpu.dot_dimension_numbers<[1], [1], [0], [0], [0, 0, 1, 0], [], []>} : vector<8x32xbf16>, vector<8x32xbf16>, vector<8x8xf32> -> vector<8x8xf32>
    %cst_15 = arith.constant dense<0xFF800000> : vector<8xf32>
    %41 = vector.multi_reduction <maximumf>, %40, %cst_15 [1] : vector<8x8xf32> to vector<8xf32>
    %42 = vector.shape_cast %41 : vector<8xf32> to vector<8x1xf32>
    %43 = vector.broadcast %42 : vector<8x1xf32> to vector<8x8xf32>
    %44 = arith.subf %40, %43 : vector<8x8xf32>
    %45 = math.exp %44 : vector<8x8xf32>
    %cst_16 = arith.constant dense<0.000000e+00> : vector<8xf32>
    %46 = vector.multi_reduction <add>, %45, %cst_16 [1] : vector<8x8xf32> to vector<8xf32>
    %47 = vector.shape_cast %46 : vector<8xf32> to vector<8x1xf32>
    %cst_17 = arith.constant 1.000000e+00 : f32
    %48 = vector.broadcast %cst_17 : f32 to vector<8x1xf32>
    %49 = arith.divf %48, %47 : vector<8x1xf32>
    %50 = vector.broadcast %49 : vector<8x1xf32> to vector<8x8xf32>
    %51 = arith.mulf %45, %50 : vector<8x8xf32>
    %52 = arith.addf %34, %51 : vector<8x8xf32>
    %53 = arith.truncf %51 : vector<8x8xf32> to vector<8x8xbf16>
    %54 = vector.extract_strided_slice %2 {offsets = [0, 64], sizes = [8, 32], strides = [1, 1]} : vector<8x128xbf16> to vector<8x32xbf16>
    %cst_18 = arith.constant dense<0.000000e+00> : vector<8x32xf32>
    %55 = tpu.matmul %53, %54, %cst_18 {dimension_numbers = #tpu.dot_dimension_numbers<[1], [0], [0], [1], [0, 0, 1, 1], [], []>} : vector<8x8xbf16>, vector<8x32xbf16>, vector<8x32xf32> -> vector<8x32xf32>
    %56 = vector.extract_strided_slice %0 {offsets = [0, 96], sizes = [8, 32], strides = [1, 1]} : vector<8x128xbf16> to vector<8x32xbf16>
    %57 = vector.extract_strided_slice %1 {offsets = [0, 96], sizes = [8, 32], strides = [1, 1]} : vector<8x128xbf16> to vector<8x32xbf16>
    %cst_19 = arith.constant dense<0.000000e+00> : vector<8x8xf32>
    %58 = tpu.matmul %56, %57, %cst_19 {dimension_numbers = #tpu.dot_dimension_numbers<[1], [1], [0], [0], [0, 0, 1, 0], [], []>} : vector<8x32xbf16>, vector<8x32xbf16>, vector<8x8xf32> -> vector<8x8xf32>
    %cst_20 = arith.constant dense<0xFF800000> : vector<8xf32>
    %59 = vector.multi_reduction <maximumf>, %58, %cst_20 [1] : vector<8x8xf32> to vector<8xf32>
    %60 = vector.shape_cast %59 : vector<8xf32> to vector<8x1xf32>
    %61 = vector.broadcast %60 : vector<8x1xf32> to vector<8x8xf32>
    %62 = arith.subf %58, %61 : vector<8x8xf32>
    %63 = math.exp %62 : vector<8x8xf32>
    %cst_21 = arith.constant dense<0.000000e+00> : vector<8xf32>
    %64 = vector.multi_reduction <add>, %63, %cst_21 [1] : vector<8x8xf32> to vector<8xf32>
    %65 = vector.shape_cast %64 : vector<8xf32> to vector<8x1xf32>
    %cst_22 = arith.constant 1.000000e+00 : f32
    %66 = vector.broadcast %cst_22 : f32 to vector<8x1xf32>
    %67 = arith.divf %66, %65 : vector<8x1xf32>
    %68 = vector.broadcast %67 : vector<8x1xf32> to vector<8x8xf32>
    %69 = arith.mulf %63, %68 : vector<8x8xf32>
    %70 = arith.addf %52, %69 : vector<8x8xf32>
    %71 = arith.truncf %69 : vector<8x8xf32> to vector<8x8xbf16>
    %72 = vector.extract_strided_slice %2 {offsets = [0, 96], sizes = [8, 32], strides = [1, 1]} : vector<8x128xbf16> to vector<8x32xbf16>
    %cst_23 = arith.constant dense<0.000000e+00> : vector<8x32xf32>
    %73 = tpu.matmul %71, %72, %cst_23 {dimension_numbers = #tpu.dot_dimension_numbers<[1], [0], [0], [1], [0, 0, 1, 1], [], []>} : vector<8x8xbf16>, vector<8x32xbf16>, vector<8x32xf32> -> vector<8x32xf32>
    %74 = tpu.concatenate %19, %37, %55, %73 in 1 : vector<8x32xf32>, vector<8x32xf32>, vector<8x32xf32>, vector<8x32xf32> -> vector<8x128xf32>
    %75 = arith.truncf %74 : vector<8x128xf32> to vector<8x128xbf16>
    %c0_24 = arith.constant 0 : index
    %c0_25 = arith.constant 0 : index
    %76 = vector.load %arg5[%c0_24, %c0_25] : memref<8x128xbf16, #tpu.memory_space<vmem>>, vector<8x128xbf16>
    tpu.vector_store %arg5[%c0_24, %c0_25], %75 {strides = array<i32>} : memref<8x128xbf16, #tpu.memory_space<vmem>>, vector<8x128xbf16>,
    %cst_26 = arith.constant 2.500000e-01 : f32
    %77 = vector.broadcast %cst_26 : f32 to vector<8x8xf32>
    %78 = arith.mulf %70, %77 : vector<8x8xf32>
    %c0_27 = arith.constant 0 : index
    %c0_28 = arith.constant 0 : index
    %c0_29 = arith.constant 0 : index
    %79 = vector.load %arg6[%c0_27, %c0_28, %c0_29] : memref<1x8x8xf32, #tpu.memory_space<vmem>>, vector<1x8x8xf32>
    %80 = vector.shape_cast %79 : vector<1x8x8xf32> to vector<8x8xf32>
    %81 = vector.shape_cast %78 : vector<8x8xf32> to vector<1x8x8xf32>
    tpu.vector_store %arg6[%c0_27, %c0_28, %c0_29], %81 {strides = array<i32>} : memref<1x8x8xf32, #tpu.memory_space<vmem>>, vector<1x8x8xf32>,
    return
  }
  func.func @transform_0(%arg0: i32, %arg1: i32) -> (i32, i32) {
    %c3_i32 = arith.constant 3 : i32
    %0 = arith.muli %c3_i32, %arg0 : i32
    %c0_i32 = arith.constant 0 : i32
    return %arg1, %0 : i32, i32
  }
  func.func @transform_1(%arg0: i32, %arg1: i32) -> (i32, i32) {
    %c3_i32 = arith.constant 3 : i32
    %0 = arith.muli %c3_i32, %arg0 : i32
    %c1_i32 = arith.constant 1 : i32
    %1 = arith.addi %0, %c1_i32 : i32
    %c0_i32 = arith.constant 0 : i32
    %c0_i32_0 = arith.constant 0 : i32
    return %c0_i32, %1 : i32, i32
  }
  func.func @transform_2(%arg0: i32, %arg1: i32) -> (i32, i32) {
    %c3_i32 = arith.constant 3 : i32
    %0 = arith.muli %c3_i32, %arg0 : i32
    %c2_i32 = arith.constant 2 : i32
    %1 = arith.addi %0, %c2_i32 : i32
    %c0_i32 = arith.constant 0 : i32
    %c0_i32_0 = arith.constant 0 : i32
    return %c0_i32, %1 : i32, i32
  }
  func.func @transform_3(%arg0: i32, %arg1: i32) -> (i32, i32) {
    %c0_i32 = arith.constant 0 : i32
    return %arg1, %arg0 : i32, i32
  }
  func.func @transform_4(%arg0: i32, %arg1: i32) -> (i32, i32, i32) {
    %c0_i32 = arith.constant 0 : i32
    %c0_i32_0 = arith.constant 0 : i32
    return %arg0, %arg1, %c0_i32 : i32, i32, i32
  }
}

module attributes {stable_mosaic.version = 11 : i64} {
  func.func @_linear_kernel(%arg0: i32, %arg1: i32, %arg2: i32, %arg3: memref<16x128xbf16, #tpu.memory_space<vmem>>, %arg4: memref<128x128xbf16, #tpu.memory_space<vmem>>, %arg5: memref<1x128xf32, #tpu.memory_space<vmem>>, %arg6: memref<16x128xf32, #tpu.memory_space<vmem>>, %arg7: memref<16x128xf32, #tpu.memory_space<vmem>>) attributes {dimension_semantics = [#tpu.dimension_semantics<parallel>, #tpu.dimension_semantics<parallel>, #tpu.dimension_semantics<arbitrary>], iteration_bounds = array<i64: 1, 1, 1>, scalar_prefetch = 0 : i64, scratch_operands = 1 : i64, tpu.core_type = #tpu.core_type<tc>, window_params = [{transform_indices = @transform_0, window_bounds = array<i64: 16, 128>}, {transform_indices = @transform_1, window_bounds = array<i64: 128, 128>}, {transform_indices = @transform_2, window_bounds = array<i64: 1, 128>}, {transform_indices = @transform_3, window_bounds = array<i64: 16, 128>}]} {
    %c0_i32 = arith.constant 0 : i32
    %0 = arith.cmpi eq, %arg2, %c0_i32 : i32
    %1 = arith.extui %0 : i1 to i32
    %c0_i32_0 = arith.constant 0 : i32
    %2 = arith.cmpi ne, %1, %c0_i32_0 : i32
    scf.if %2 {
      %c0_10 = arith.constant 0 : index
      %c0_11 = arith.constant 0 : index
      %12 = vector.load %arg5[%c0_10, %c0_11] : memref<1x128xf32, #tpu.memory_space<vmem>>, vector<1x128xf32>
      %13 = vector.shape_cast %12 : vector<1x128xf32> to vector<1x128xf32>
      %14 = vector.broadcast %13 : vector<1x128xf32> to vector<16x128xf32>
      %c0_12 = arith.constant 0 : index
      %c0_13 = arith.constant 0 : index
      %15 = vector.load %arg7[%c0_12, %c0_13] : memref<16x128xf32, #tpu.memory_space<vmem>>, vector<16x128xf32>
      tpu.vector_store %arg7[%c0_12, %c0_13], %14 {strides = array<i32>} : memref<16x128xf32, #tpu.memory_space<vmem>>, vector<16x128xf32>,
    } else {
    }
    %c0 = arith.constant 0 : index
    %c0_1 = arith.constant 0 : index
    %3 = vector.load %arg7[%c0, %c0_1] : memref<16x128xf32, #tpu.memory_space<vmem>>, vector<16x128xf32>
    %c0_2 = arith.constant 0 : index
    %c0_3 = arith.constant 0 : index
    %4 = vector.load %arg3[%c0_2, %c0_3] : memref<16x128xbf16, #tpu.memory_space<vmem>>, vector<16x128xbf16>
    %c0_4 = arith.constant 0 : index
    %c0_5 = arith.constant 0 : index
    %5 = vector.load %arg4[%c0_4, %c0_5] : memref<128x128xbf16, #tpu.memory_space<vmem>>, vector<128x128xbf16>
    %cst = arith.constant dense<0.000000e+00> : vector<16x128xf32>
    %6 = tpu.matmul %4, %5, %cst {dimension_numbers = #tpu.dot_dimension_numbers<[1], [0], [0], [1], [0, 0, 1, 1], [], []>} : vector<16x128xbf16>, vector<128x128xbf16>, vector<16x128xf32> -> vector<16x128xf32>
    %7 = arith.addf %3, %6 : vector<16x128xf32>
    %c0_6 = arith.constant 0 : index
    %c0_7 = arith.constant 0 : index
    %8 = vector.load %arg7[%c0_6, %c0_7] : memref<16x128xf32, #tpu.memory_space<vmem>>, vector<16x128xf32>
    tpu.vector_store %arg7[%c0_6, %c0_7], %7 {strides = array<i32>} : memref<16x128xf32, #tpu.memory_space<vmem>>, vector<16x128xf32>,
    %c0_i32_8 = arith.constant 0 : i32
    %9 = arith.cmpi eq, %arg2, %c0_i32_8 : i32
    %10 = arith.extui %9 : i1 to i32
    %c0_i32_9 = arith.constant 0 : i32
    %11 = arith.cmpi ne, %10, %c0_i32_9 : i32
    scf.if %11 {
      %c0_10 = arith.constant 0 : index
      %c0_11 = arith.constant 0 : index
      %12 = vector.load %arg7[%c0_10, %c0_11] : memref<16x128xf32, #tpu.memory_space<vmem>>, vector<16x128xf32>
      %c0_12 = arith.constant 0 : index
      %c0_13 = arith.constant 0 : index
      %13 = vector.load %arg6[%c0_12, %c0_13] : memref<16x128xf32, #tpu.memory_space<vmem>>, vector<16x128xf32>
      tpu.vector_store %arg6[%c0_12, %c0_13], %12 {strides = array<i32>} : memref<16x128xf32, #tpu.memory_space<vmem>>, vector<16x128xf32>,
    } else {
    }
    return
  }
  func.func @transform_0(%arg0: i32, %arg1: i32, %arg2: i32) -> (i32, i32) {
    %c0_i32 = arith.constant 0 : i32
    return %arg0, %arg2 : i32, i32
  }
  func.func @transform_1(%arg0: i32, %arg1: i32, %arg2: i32) -> (i32, i32) {
    %c0_i32 = arith.constant 0 : i32
    return %arg2, %arg1 : i32, i32
  }
  func.func @transform_2(%arg0: i32, %arg1: i32, %arg2: i32) -> (i32, i32) {
    %c0_i32 = arith.constant 0 : i32
    %c0_i32_0 = arith.constant 0 : i32
    return %c0_i32, %arg1 : i32, i32
  }
  func.func @transform_3(%arg0: i32, %arg1: i32, %arg2: i32) -> (i32, i32) {
    %c0_i32 = arith.constant 0 : i32
    return %arg0, %arg1 : i32, i32
  }
}

</mosaic_0001>

<bundles_post_ra>
// kernel: mul.9
= control target key start
LH: loop header
LB: loop body
LE: loop exit
PB: predicated region body
PF: predicated region fallthrough
CT: control target
= control target key end

     0   :  { %s34_s0 = inlined_call_operand.vmem [shape: f32[384], index: 0, kind: input, shape index: {}]   ;;  %s35_s1 = inlined_call_operand.vmem [shape: f32[384], index: 1, kind: input, shape index: {}]   ;;  %s36_s2 = inlined_call_operand.vmem [shape: f32[384], index: 2, kind: output, shape index: {}]  }
   0x1   :  { %v3_v0 = vld [vmem:[%s34_s0] sm:$0x7] }
   0x2   :  { %v4_v1 = vld [vmem:[%s35_s1] sm:$0x7] }
   0x3   :  { %v7_v2 = vmul.f32 %v4_v1, %v3_v0 }
   0x5   :  { %9 = vst [vmem:[%s36_s2] sm:$0xf] %v7_v2 }

// kernel: multihead_attention_forward.3
= control target key start
LH: loop header
LB: loop body
LE: loop exit
PB: predicated region body
PF: predicated region fallthrough
CT: control target
= control target key end

     0   :  { %v447_v0 = vmov 0.0   ;;  %vm448_vm0 = vmmov 0   ;;  %v449_v3 = vmov 0   ;;  %v21_v27 = vlaneseq  ;;  %s560_s1 = inlined_call_operand.vmem [shape: bf16[128,384], index: 1, kind: input, shape index: {}]   ;;  %s561_s0 = inlined_call_operand.vmem [shape: bf16[16,128], index: 0, kind: input, shape index: {}]   ;;  %s562_s2 = inlined_call_operand.vmem [shape: f32[1,384], index: 2, kind: input, shape index: {}]   ;;  %s563_s3 = inlined_call_operand.vmem [shape: bf16[16,384], index: 3, kind: output, shape index: {}]  }
   0x1   :  { %391 = vmatprep.subr.bf16.mxu1 %v447_v0  ;;  %v414_v1 = vld [vmem:[%s560_s1 + $0xac] ss:$12 sps:$4 sm:$0xff]   ;;  %407 = vmatprep.mubr.msk.bf16.mxu1 %vm448_vm0, %v447_v0  ;;  %v416_v2 = vld [vmem:[%s560_s1 + $0xb0] ss:$12 sps:$4 sm:$0xff]   ;;  %v417_v4 = vld [vmem:[%s560_s1 + $0xa8] ss:$12 sps:$4 sm:$0xff]  }
   0x2   :  { %248 = vmatprep.mubr.bf16.mxu0 %v449_v3  ;;  %216 = vmatprep.subr.bf16.mxu0 %v414_v1  ;;  %v418_v5 = vld [vmem:[%s560_s1 + $0x94] ss:$12 sps:$4 sm:$0xff]   ;;  %v420_v6 = vld [vmem:[%s560_s1 + $0x98] ss:$12 sps:$4 sm:$0xff]   ;;  %v421_v7 = vld [vmem:[%s560_s1 + $0x90] ss:$12 sps:$4 sm:$0xff]  }
   0x3   :  { %392 = vmatpush3.bf16.msra.mxu1 %v416_v2  ;;  %217 = vmatpush1.bf16.msra.mxu0 %v417_v4  ;;  %v422_v8 = vld [vmem:[%s560_s1 + $0x7c] ss:$12 sps:$4 sm:$0xff]   ;;  %v424_v9 = vld [vmem:[%s560_s1 + $0x80] ss:$12 sps:$4 sm:$0xff]   ;;  %v425_v10 = vld [vmem:[%s560_s1 + $0x78] ss:$12 sps:$4 sm:$0xff]  }
   0x4   :  { %393 = vmatprep.subr.bf16.mxu1 %v447_v0  ;;  %218 = vmatprep.subr.bf16.mxu0 %v418_v5  ;;  %v426_v11 = vld [vmem:[%s560_s1 + $0x64] ss:$12 sps:$4 sm:$0xff]   ;;  %v428_v12 = vld [vmem:[%s560_s1 + $0x68] ss:$12 sps:$4 sm:$0xff]   ;;  %v429_v13 = vld [vmem:[%s560_s1 + $0x60] ss:$12 sps:$4 sm:$0xff]  }
   0x5   :  { %v430_v14 = vld [vmem:[%s560_s1 + $0x4c] ss:$12 sps:$4 sm:$0xff]   ;;  %v432_v15 = vld [vmem:[%s560_s1 + $0x50] ss:$12 sps:$4 sm:$0xff]   ;;  %v433_v16 = vld [vmem:[%s560_s1 + $0x48] ss:$12 sps:$4 sm:$0xff]  }
   0x6   :  { %v434_v17 = vld [vmem:[%s560_s1 + $0x34] ss:$12 sps:$4 sm:$0xff]   ;;  %v436_v18 = vld [vmem:[%s560_s1 + $0x38] ss:$12 sps:$4 sm:$0xff]   ;;  %v437_v19 = vld [vmem:[%s560_s1 + $0x30] ss:$12 sps:$4 sm:$0xff]  }
   0x7   :  { %394 = vmatpush3.bf16.msra.mxu1 %v420_v6  ;;  %219 = vmatpush1.bf16.msra.mxu0 %v421_v7  ;;  %v438_v20 = vld [vmem:[%s560_s1 + $0x1c] ss:$12 sps:$4 sm:$0xff]   ;;  %v440_v21 = vld [vmem:[%s560_s1 + $0x20] ss:$12 sps:$4 sm:$0xff]   ;;  %v441_v22 = vld [vmem:[%s560_s1 + $0x18] ss:$12 sps:$4 sm:$0xff]  }
   0x8   :  { %395 = vmatprep.subr.bf16.mxu1 %v447_v0  ;;  %220 = vmatprep.subr.bf16.mxu0 %v422_v8  ;;  %v442_v23 = vld [vmem:[%s560_s1 + $0x4] ss:$12 sps:$4 sm:$0xff]   ;;  %v444_v24 = vld [vmem:[%s560_s1 + $0x8] ss:$12 sps:$4 sm:$0xff]   ;;  %v445_v25 = vld [vmem:[%s560_s1] ss:$12 sps:$4 sm:$0xff]  }
   0x9   :  { %v446_v26 = vld [vmem:[%s561_s0] sm:$0xff]   ;;  %v22_v28 = vshrl.u32 %v21_v27, 7 }
   0xa   :  { %v19_v30 = vld [vmem:[%s562_s2] sm:$0x7] }
   0xb   :  { %396 = vmatpush3.bf16.msra.mxu1 %v424_v9  ;;  %221 = vmatpush1.bf16.msra.mxu0 %v425_v10  ;;  %v31_v29 = vsub.s32 2, %v22_v28  ;;  %v23_v31 = vsub.s32 0, %v22_v28  ;;  %v27_v32 = vsub.s32 1, %v22_v28 }
   0xc   :  { %397 = vmatprep.subr.bf16.mxu1 %v447_v0  ;;  %222 = vmatprep.subr.bf16.mxu0 %v426_v11 }
   0xd   :  { %v32_v33 = vrot.slane %v19_v30, %v31_v29  ;;  %v24_v35 = vrot.slane %v19_v30, %v23_v31  ;;  %v28_v36 = vrot.slane %v19_v30, %v27_v32 }
   0xf   :  { %398 = vmatpush3.bf16.msra.mxu1 %v428_v12  ;;  %223 = vmatpush1.bf16.msra.mxu0 %v429_v13 }
  0x10   :  { %399 = vmatprep.subr.bf16.mxu1 %v447_v0  ;;  %224 = vmatprep.subr.bf16.mxu0 %v430_v14 }
  0x13   :  { %400 = vmatpush3.bf16.msra.mxu1 %v432_v15  ;;  %225 = vmatpush1.bf16.msra.mxu0 %v433_v16 }
  0x14   :  { %401 = vmatprep.subr.bf16.mxu1 %v447_v0  ;;  %226 = vmatprep.subr.bf16.mxu0 %v434_v17 }
  0x17   :  { %402 = vmatpush3.bf16.msra.mxu1 %v436_v18  ;;  %227 = vmatpush1.bf16.msra.mxu0 %v437_v19 }
  0x18   :  { %403 = vmatprep.subr.bf16.mxu1 %v447_v0  ;;  %228 = vmatprep.subr.bf16.mxu0 %v438_v20 }
  0x1b   :  { %404 = vmatpush3.bf16.msra.mxu1 %v440_v21  ;;  %229 = vmatpush1.bf16.msra.mxu0 %v441_v22 }
  0x1c   :  { %405 = vmatprep.subr.bf16.mxu1 %v447_v0  ;;  %230 = vmatprep.subr.bf16.mxu0 %v442_v23 }
  0x1f   :  { %406 = vmatpush3.bf16.msra.mxu1 %v444_v24  ;;  %231 = vmatpush1.bf16.msra.mxu0 %v445_v25 }
  0x22   :  { %408 = vmatmul.mubr.bf16.vlgmr.msra.gmra.mxu1 %v446_v26  ;;  %249 = vmatmul.mubr.bf16.vlgmr.msra.gmra.mxu0 %v446_v26 }
  0xe2   :  { %v293_v34 = vpop.f32.mrf.mxu1  ;;  %v250_v38 = vpop.f32.mrf.mxu0 }
  0xe3   :  { %v302_v37 = vadd.f32 %v293_v34, %v32_v33  ;;  %v300_v42 = vadd.f32 %v250_v38, %v24_v35 }
  0xe4   :  { %v409_v39 = vpop.f32.mrf.mxu1  ;;  %v252_v41 = vpop.f32.mrf.mxu0 }
  0xe5   :  { %v379_v40 = vpack.c.bf16 %v302_v37, %v302_v37  ;;  %v301_v43 = vadd.f32 %v252_v41, %v28_v36 }
  0xe6   :  { %v296_v44 = vpop.f32.mrf.mxu1  ;;  %v254_v46 = vpop.f32.mrf.mxu0 }
  0xe7   :  { %342 = vst [vmem:[%s563_s3 + $0x8] sm:$0xf] %v379_v40  ;;  %v305_v45 = vadd.f32 %v296_v44, %v32_v33  ;;  %v378_v47 = vpack.c.bf16 %v301_v43, %v300_v42  ;;  %v303_v51 = vadd.f32 %v254_v46, %v24_v35 }
  0xe8   :  { %v410_v48 = vpop.f32.mrf.mxu1  ;;  %v256_v50 = vpop.f32.mrf.mxu0 }
  0xe9   :  { %v381_v49 = vpack.c.bf16 %v305_v45, %v305_v45  ;;  %341 = vst [vmem:[%s563_s3] sm:$0xff] %v378_v47  ;;  %v304_v52 = vadd.f32 %v256_v50, %v28_v36 }
  0xeb   :  { %344 = vst [vmem:[%s563_s3 + $0x14] sm:$0xf] %v381_v49  ;;  %v380_v53 = vpack.c.bf16 %v304_v52, %v303_v51 }
  0xed   :  { %343 = vst [vmem:[%s563_s3 + $0xc] sm:$0xff] %v380_v53 }

// kernel: multihead_attention_forward.5
= control target key start
LH: loop header
LB: loop body
LE: loop exit
PB: predicated region body
PF: predicated region fallthrough
CT: control target
= control target key end

     0   :  { %v246_v1 = vmov 0.0   ;;  %vm247_vm0 = vmmov 0   ;;  %s304_s0 = inlined_call_operand.vmem [shape: bf16[16,128], index: 0, kind: input, shape index: {}]   ;;  %s305_s1 = inlined_call_operand.vmem [shape: bf16[128,128], index: 1, kind: input, shape index: {}]   ;;  %s306_s2 = inlined_call_operand.vmem [shape: f32[1,128], index: 2, kind: input, shape index: {}]   ;;  %s307_s3 = inlined_call_operand.hbm [shape: f32[16,128], index: 3, kind: output, shape index: {}]  }
   0x1   :  { %v215_v0 = vld [vmem:[%s305_s1 + $0x38] sm:$0xff]   ;;  %190 = vmatprep.subr.bf16.mxu0 %v246_v1  ;;  %v216_v2 = vld [vmem:[%s305_s1 + $0x30] sm:$0xff]   ;;  %206 = vmatprep.mubr.msk.bf16.mxu0 %vm247_vm0, %v246_v1  ;;  %v217_v3 = vld [vmem:[%s305_s1 + $0x28] sm:$0xff]  }
   0x2   :  { %191 = vmatpush3.bf16.msra.mxu0 %v215_v0 }
   0x3   :  { %192 = vmatprep.subr.bf16.mxu0 %v246_v1 }
   0x6   :  { %193 = vmatpush3.bf16.msra.mxu0 %v216_v2 }
   0x7   :  { %194 = vmatprep.subr.bf16.mxu0 %v246_v1 }
   0x8   :  { %8 = vsyncpa [#allocation4], 0  ;;  %v218_v4 = vld [vmem:[%s305_s1 + $0x20] sm:$0xff]   ;;  %v219_v5 = vld [vmem:[%s305_s1 + $0x18] sm:$0xff]   ;;  %s248_s5 = smov [#allocation3]  }
   0x9   :  { %v220_v6 = vld [vmem:[%s305_s1 + $0x10] sm:$0xff]   ;;  %v221_v7 = vld [vmem:[%s305_s1 + $0x8] sm:$0xff]   ;;  %v222_v8 = vld [vmem:[%s305_s1] sm:$0xff]   ;;  %s160_s6 = sshll.u32 %s248_s5, 4  ;;  %s161_s6 = int_to_ptr.vmem [resolvable:$true] %s160_s6 }
   0xa   :  { %195 = vmatpush3.bf16.msra.mxu0 %v217_v3  ;;  %v223_v9 = vld [vmem:[%s304_s0] sm:$0xff]   ;;  %s224_s1 = scalar_lea.vmem %s161_s6, 256  ;;  %p229_p1 = scmp.lt.s32.totalorder %s161_s6, %s161_s6 }
   0xb   :  { %196 = vmatprep.subr.bf16.mxu0 %v246_v1  ;;  %v171_v10 = vld [vmem:[%s306_s2] ss:$0 sm:$0xff]  ;;  %p225_p0 = scmp.ne.s32.totalorder %s161_s6, %s224_s1  ;;  %p230_p2 = scmp.lt.s32.totalorder %s224_s1, %s224_s1 }
   0xd   :  { %p231_p3 = por %p230_p2, %p229_p1 }
   0xe   :  { %197 = vmatpush3.bf16.msra.mxu0 %v218_v4 }
   0xf   :  { %198 = vmatprep.subr.bf16.mxu0 %v246_v1  ;;  %p232_p4 = pnand %p231_p3, %p225_p0 }
  0x12   :  { %199 = vmatpush3.bf16.msra.mxu0 %v219_v5 }
  0x13   :  { %200 = vmatprep.subr.bf16.mxu0 %v246_v1 }
  0x16   :  { %201 = vmatpush3.bf16.msra.mxu0 %v220_v6 }
  0x17   :  { %202 = vmatprep.subr.bf16.mxu0 %v246_v1 }
  0x1a   :  { %203 = vmatpush3.bf16.msra.mxu0 %v221_v7 }
  0x1b   :  { %204 = vmatprep.subr.bf16.mxu0 %v246_v1 }
  0x1e   :  { %205 = vmatpush3.bf16.msra.mxu0 %v222_v8 }
  0x21   :  { %207 = vmatmul.mubr.bf16.vlgmr.msra.gmra.mxu0 %v223_v9 }
  0xe1   :  { %v137_v11 = vpop.f32.mrf.mxu0 }
  0xe2   :  { %v144_v12 = vadd.f32 %v171_v10, %v137_v11 }
  0xe3   :  { %v208_v13 = vpop.f32.mrf.mxu0 }
  0xe4   :  { %153 = vst [vmem:[#allocation3] sm:$0xff] %v144_v12 }
  0xe5   :  { %v140_v14 = vpop.f32.mrf.mxu0 }
  0xe6   :  { %v145_v15 = vadd.f32 %v171_v10, %v140_v14 }
  0xe7   :  { %v209_v16 = vpop.f32.mrf.mxu0 }
  0xe8   :  { %154 = vst [vmem:[#allocation3 + $0x8] sm:$0xff] %v145_v15 }
  0xe9   :  { %235 = shalt.err (!%p232_p4)
}
  0xea   :  { %s249_s0 = smov 128   ;;  %s250_s2 = smov 8  }
  0xeb   :  { %166 = dma.vmem_to_hbm [thread:$0]  %s161_s6, 256, %s307_s3, [#allocation4], %s249_s0, %s249_s0, %s250_s2  }
  0xec   :  { %244 = dma.done.wait [#allocation4], 256  }
  0xed   :  { %245 = vsyncadd [#allocation4], 4294967040 }
  0xee   :  { %170 = vsyncpa [#allocation4], 1 }

// kernel: multihead_attention_forward.4
= control target key start
LH: loop header
LB: loop body
LE: loop exit
PB: predicated region body
PF: predicated region fallthrough
CT: control target
= control target key end

     0   :  { %10 = vsyncpa [#allocation3], 0  ;;  %s1416_s0 = inlined_call_operand.vmem [shape: bf16[8,768], index: 0, kind: input, shape index: {}, may-alias: {0,1,2}]   ;;  %s1417_s1 = inlined_call_operand.vmem [shape: bf16[8,768], index: 1, kind: input, shape index: {}, may-alias: {0,1,2}]   ;;  %s1418_s2 = inlined_call_operand.vmem [shape: bf16[8,768], index: 2, kind: input, shape index: {}, may-alias: {0,1,2}]   ;;  %s1419_s3 = inlined_call_operand.vmem [shape: bf16[8,256], index: 3, kind: output, shape index: {0}]   ;;  %s1420_s4 = inlined_call_operand.hbm [shape: f32[2,8,8], index: 4, kind: output, shape index: {1}]  }
   0x1   :  { %12 = vsyncpa [#allocation3 + $0x1], 0  ;;  %s1226_s15 = smov 0   ;;  %s1228_s16 = smov 0  }
   0x2   :  { %s1230_s17 = smov 0   ;;  %s1232_s18 = smov 0  }
   0x3   :  { %s1234_s19 = smov 0   ;;  %s1236_s20 = smov 0  }
   0x4 LB: > { %s949_s21 = sadd.s32 4294967295, %s1193_s20   ;;  %s950_s22 = sadd.s32 4294967294, %s1193_s20   ;;  %s1193_s20 = sphi %s1236_s20, %s18_s20   ;;  %s1189_s19 = sphi %s1234_s19, %s1427_s19   ;;  %s1185_s18 = sphi %s1232_s18, %s1426_s18   ;;  %s1181_s17 = sphi %s1230_s17, %s1425_s17   ;;  %s1177_s16 = sphi %s1228_s16, %s1424_s16   ;;  %s1173_s15 = sphi %s1226_s15, %s1423_s15  }
   0x5   : > { %s30_s23 = sadd.s32 1, %s1189_s19  ;;  %s157_s24 = sadd.s32 1, %s1181_s17 }
   0x6   : > { %p32_p0 = scmp.ge.s32.totalorder %s30_s23, 2  ;;  %p167_p1 = scmp.ne.s32.totalorder %s1181_s17, %s1177_s16 }
   0x7   : > { %p168_p2 = scmp.eq.s32.totalorder %s949_s21, 1  ;;  %p173_p3 = scmp.ne.s32.totalorder %s1177_s16, %s1173_s15 }
   0x8   : > { %s1429_s23 = smov (%p32_p0, %s30_s23), 0  ;;  %p174_p5 = scmp.eq.s32.totalorder %s950_s22, 1 }
   0x9   : > { %p1266_p4 = por %p168_p2, %p167_p1  ;;  %s152_s26 = ssub.s32 %s1189_s19, %s1429_s23 }
   0xa   : > { %p953_p6 = scmp.ge.s32.totalorder %s1193_s20, 1  ;;  %p155_p7 = scmp.eq.s32.totalorder %s152_s26, 0 }
   0xb   : > { %p1273_p8 = por %p174_p5, %p173_p3  ;;  %p227_p9 = scmp.lt.s32.totalorder %s1193_s20, 3 }
   0xc   : > { %s1279_s28 = scalar_select %p155_p7, %s1181_s17, %s157_s24  }
   0xd   : > { %p228_p10 = pnand %p953_p6, %p227_p9 }
   0xe   : > { %s1282_s29 = smul.u32 (!%p228_p10), 3, %s1185_s18  ;;  %s1197_s14 = smov (!%p228_p10), 96  }
   0xf   : > { %231 = sbr.rel (%p228_p10) target bundleno = 1420 (0x58c), region = 32  ;;  %s1198_s21 = smov (!%p228_p10), 64  }
  0x10   : > { %s288_s30 = sadd.s32 (!%p228_p10), 1, %s1282_s29  ;;  %p280_p11 = scmp.lt.s32.totalorder (!%p228_p10), %s1282_s29, 5 }
  0x11   : > { %p289_p12 = scmp.lt.s32.totalorder (!%p228_p10), %s288_s30, 5  ;;  %s1199_s22 = smov (!%p228_p10), 32  }
  0x12   : > { %s296_s24 = sadd.s32 (!%p228_p10), 2, %s1282_s29 }
  0x13   : > { %p297_p13 = scmp.lt.s32.totalorder (!%p228_p10), %s296_s24, 5 }
  0x14   : > { %v1195_v0 = vmov 0.0   ;;  %vm1196_vm0 = vmmov 0   ;;  %s281_s5 = scalar_select %p280_p11, %s1282_s29, 5  ;;  %vm315_vm1 = vcmask 261120   ;;  %vm362_vm2 = vcmask 64512  }
  0x15   : > { %990 = vmatprep.subr.bf16.mxu0 %v1195_v0  ;;  %992 = vmatprep.mubr.msk.bf16.mxu0 %vm1196_vm0, %v1195_v0  ;;  %s1431_s30 = smov (!%p289_p12, %s288_s30), 5  ;;  %s1433_s24 = smov (!%p297_p13, %s296_s24), 5  ;;  %vm379_vm3 = vcmask 1043456  }
  0x16   : > { %996 = vmatprep.subr.bf16.mxu1 %v1195_v0  ;;  %998 = vmatprep.mubr.msk.bf16.mxu1 %vm1196_vm0, %v1195_v0  ;;  %s956_s6 = sshll.u32 %s1431_s30, 2  ;;  %s955_s10 = sshll.u32 %s281_s5, 2 }
  0x17   : > { %s292_s9 = scalar_lea.vmem %s1417_s1, %s956_s6  ;;  %s285_s13 = scalar_lea.vmem %s1416_s0, %s955_s10 }
  0x18   : > { %v313_v1 = vld [vmem:[%s292_s9] sm:$0xf]  ;;  %s957_s26 = sshll.u32 %s1433_s24, 2  ;;  %s274_s29 = sand.u32 1, %s1177_s16  }
  0x19   : > { %v320_v2 = vsel %vm315_vm1, %v313_v1, 0  ;;  %v312_v3 = vld [vmem:[%s285_s13] sm:$0xf]  ;;  %v962_v9 = vcombine.low %v313_v1, %v313_v1  ;;  %s300_s6 = scalar_lea.vmem %s1418_s2, %s957_s26  ;;  %s954_s7 = sshll.u32 %s274_s29, 3 }
  0x1a   : > { %991 = vmatpush3.bf16.xpose.msra.mxu0 %v320_v2  ;;  %v961_v10 = vcombine.low %v312_v3, %v312_v3  ;;  %v1315_v16 = vld [vmem:[%s300_s6] sm:$0xf]  ;;  %s276_s8 = scalar_lea.vmem [#allocation2], %s954_s7  ;;  %s971_s9 = sshll.u32 %s1185_s18, 7 }
  0x1b   : > { %1008 = vmatprep.subr.bf16.mxu0 %v1195_v0  ;;  %431 = vrot.lane.b32.xlu1 %v962_v9, %s1197_s14  ;;  %v381_v17 = vsel %vm379_vm3, %v1315_v16, 0  ;;  %v964_v60 = vcombine.low %v1315_v16, %v1315_v16  ;;  %s815_s10 = sshll.u32 %s276_s8, 4  ;;  %s813_s13 = scalar_lea.hbm %s1420_s4, %s971_s9  ;;  %s816_s10 = int_to_ptr.vmem [resolvable:$true] %s815_s10 }
  0x1c   : > { %997 = vmatpush3.bf16.msra.mxu1 %v381_v17  ;;  %s798_s24 = scalar_lea.sflag [#allocation3], %s274_s29  ;;  %s1117_s26 = scalar_lea.vmem %s816_s10, 128 }
  0x1d   : > { %1002 = vmatprep.subr.bf16.mxu1 %v1195_v0  ;;  %p1118_p0 = scmp.ne.s32.totalorder %s816_s10, %s1117_s26 }
  0x1f   : > { %426 = vrot.lane.b32.xlu1 %v961_v10, %s1197_s14  ;;  %p1119_p1 = pnand %p1118_p0, %p1266_p4 }
  0x21   : > { %993 = vmatmul.mubr.msk.bf16.vlgmr.msra.gmra.mxu0 %vm315_vm1, %v312_v3  ;;  %p1120_p2 = pneg %p1119_p1 }
  0x22   : > { %1010 = vmatprep.mubr.msk.bf16.mxu0 %vm1196_vm0, %v1195_v0 }
  0x23   : > { %544 = vrot.lane.b32.xlu1 %v961_v10, %s1198_s21 }
  0x27   : > { %658 = vrot.lane.b32.xlu1 %v962_v9, %s1199_s22 }
  0x2b   : > { %656 = vrot.lane.b32.xlu1 %v961_v10, %s1199_s22 }
  0x8d   : > { %v432_v20 = vpop.permute.xlu1 %431 }
  0x8e   : > { %v437_v22 = vsel %vm315_vm1, %v432_v20, 0 }
  0x91   : > { %v427_v24 = vpop.permute.xlu1 %426 }
  0x95   : > { %v545_v26 = vpop.permute.xlu1 %544 }
  0x99   : > { %v659_v28 = vpop.permute.xlu1 %658 }
  0x9a   : > { %v664_v29 = vsel %vm315_vm1, %v659_v28, 0 }
  0x9d   : > { %v657_v30 = vpop.permute.xlu1 %656 }
  0xe1   : > { %v356_v4 = vpop.f32.mrf.mxu0 }
  0xe2   : > { %v363_v5 = vsel %vm362_vm2, %v356_v4, -inf }
  0xe3   : > { %364 = vmax.xlane.f32.xlu0 %v363_v5  ;;  %v994_v6 = vpop.f32.mrf.mxu0 }
  0xe5   : > { %v359_v7 = vpop.f32.mrf.mxu0 }
  0xe7   : > { %v995_v8 = vpop.f32.mrf.mxu0 }
 0x16c   : > { %v365_v11 = vpop.xlane.xlu0 %364 }
 0x16d   : > { %v366_v12 = vsub.f32 %v356_v4, %v365_v11 }
 0x16f   : > { %v367_v13 = vmul.f32 1.442695, %v366_v12 }
 0x171   : > { %1101 = vpow2.f32 %v367_v13 }
 0x17e   : > { %v1102_v14 = vpop.eup %1101 }
 0x17f   : > { %v369_v15 = vsel %vm362_vm2, %v1102_v14, 0.0 }
 0x180   : > { %370 = vadd.xlane.f32.xlu0 %v369_v15 }
 0x196   : > { %546 = vrot.lane.b32.xlu0 %v962_v9, %s1198_s21 }
 0x209   : > { %v371_v18 = vpop.xlane.xlu0 %370 }
 0x20a   : > { %1103 = vrcp.f32 %v371_v18 }
 0x20d   : > { %v547_v25 = vpop.permute.xlu0 %546 }
 0x20e   : > { %v552_v27 = vsel %vm315_vm1, %v547_v25, 0 }
 0x217   : > { %v1104_v19 = vpop.eup %1103 }
 0x218   : > { %v1321_v21 = vmul.f32 %v1104_v19, %v1102_v14 }
 0x21a   : > { %v375_v23 = vpack.c.bf16 %v1321_v21, %v1321_v21 }
 0x21c   : > { %999 = vmatmul.mubr.msk.bf16.vlgmr.msra.gmra.mxu1 %vm362_vm2, %v375_v23 }
 0x21d   : > { %1003 = vmatpush3.bf16.xpose.msra.mxu1 %v437_v22  ;;  %1004 = vmatprep.mubr.msk.bf16.mxu1 %vm1196_vm0, %v1195_v0 }
 0x21e   : > { %1014 = vmatprep.subr.bf16.mxu1 %v1195_v0 }
 0x224   : > { %1005 = vmatmul.mubr.msk.bf16.vlgmr.msra.gmra.mxu1 %vm315_vm1, %v427_v24 }
 0x225   : > { %1015 = vmatpush3.bf16.xpose.msra.mxu1 %v552_v27  ;;  %1016 = vmatprep.mubr.msk.bf16.mxu1 %vm1196_vm0, %v1195_v0 }
 0x226   : > { %1026 = vmatprep.subr.bf16.mxu1 %v1195_v0 }
 0x22c   : > { %1017 = vmatmul.mubr.msk.bf16.vlgmr.msra.gmra.mxu1 %vm315_vm1, %v545_v26 }
 0x22d   : > { %1027 = vmatpush3.bf16.xpose.msra.mxu1 %v664_v29  ;;  %1028 = vmatprep.mubr.msk.bf16.mxu1 %vm1196_vm0, %v1195_v0 }
 0x234   : > { %1029 = vmatmul.mubr.msk.bf16.vlgmr.msra.gmra.mxu1 %vm315_vm1, %v657_v30 }
 0x2dc   : > { %v1340_v31 = vpop.f32.mrf.mxu1 }
 0x2de   : > { %v1000_v32 = vpop.f32.mrf.mxu1 }
 0x2e0   : > { %v420_v33 = vpop.f32.mrf.mxu1 }
 0x2e2   : > { %v1001_v34 = vpop.f32.mrf.mxu1 }
 0x2e4   : > { %v473_v35 = vpop.f32.mrf.mxu1 }
 0x2e5   : > { %v479_v36 = vsel %vm362_vm2, %v473_v35, -inf }
 0x2e6   : > { %480 = vmax.xlane.f32.xlu1 %v479_v36  ;;  %v1006_v37 = vpop.f32.mrf.mxu1 }
 0x2e8   : > { %v476_v38 = vpop.f32.mrf.mxu1 }
 0x2ea   : > { %v1007_v39 = vpop.f32.mrf.mxu1 }
 0x2ec   : > { %v588_v40 = vpop.f32.mrf.mxu1 }
 0x2ed   : > { %v594_v41 = vsel %vm362_vm2, %v588_v40, -inf }
 0x2ee   : > { %595 = vmax.xlane.f32.xlu0 %v594_v41  ;;  %v1018_v42 = vpop.f32.mrf.mxu1 }
 0x2f0   : > { %v591_v43 = vpop.f32.mrf.mxu1 }
 0x2f2   : > { %v1019_v44 = vpop.f32.mrf.mxu1 }
 0x2f4   : > { %v700_v45 = vpop.f32.mrf.mxu1 }
 0x2f5   : > { %v706_v46 = vsel %vm362_vm2, %v700_v45, -inf }
 0x2f6   : > { %707 = vmax.xlane.f32.xlu1 %v706_v46  ;;  %v1030_v47 = vpop.f32.mrf.mxu1 }
 0x2f8   : > { %v703_v48 = vpop.f32.mrf.mxu1 }
 0x2fa   : > { %v1031_v49 = vpop.f32.mrf.mxu1 }
 0x36f   : > { %v481_v50 = vpop.xlane.xlu1 %480 }
 0x370   : > { %v482_v51 = vsub.f32 %v473_v35, %v481_v50 }
 0x372   : > { %v483_v52 = vmul.f32 1.442695, %v482_v51 }
 0x374   : > { %1105 = vpow2.f32 %v483_v52 }
 0x377   : > { %v596_v53 = vpop.xlane.xlu0 %595 }
 0x378   : > { %v597_v54 = vsub.f32 %v588_v40, %v596_v53 }
 0x37a   : > { %v598_v55 = vmul.f32 1.442695, %v597_v54 }
 0x37c   : > { %1107 = vpow2.f32 %v598_v55 }
 0x37f   : > { %v708_v61 = vpop.xlane.xlu1 %707 }
 0x380   : > { %v709_v62 = vsub.f32 %v700_v45, %v708_v61 }
 0x381   : > { %v1106_v56 = vpop.eup %1105 }
 0x382   : > { %v485_v57 = vsel %vm362_vm2, %v1106_v56, 0.0  ;;  %v710_v63 = vmul.f32 1.442695, %v709_v62 }
 0x383   : > { %486 = vadd.xlane.f32.xlu1 %v485_v57 }
 0x384   : > { %1109 = vpow2.f32 %v710_v63 }
 0x389   : > { %v1108_v58 = vpop.eup %1107 }
 0x38a   : > { %v600_v59 = vsel %vm362_vm2, %v1108_v58, 0.0 }
 0x38b   : > { %601 = vadd.xlane.f32.xlu0 %v600_v59 }
 0x391   : > { %v1110_v1 = vpop.eup %1109 }
 0x392   : > { %v712_v2 = vsel %vm362_vm2, %v1110_v1, 0.0 }
 0x394   : > { %608 = vrot.lane.b32.xlu1 %v964_v60, %s1198_s21 }
 0x3a1   : > { %496 = vrot.lane.b32.xlu0 %v964_v60, %s1197_s14 }
 0x3b8   : > { %713 = vadd.xlane.f32.xlu1 %v712_v2 }
 0x3c9   : > { %720 = vrot.lane.b32.xlu1 %v964_v60, %s1199_s22 }
 0x40c   : > { %v487_v3 = vpop.xlane.xlu1 %486 }
 0x40d   : > { %1111 = vrcp.f32 %v487_v3 }
 0x410   : > { %v609_v9 = vpop.permute.xlu1 %608 }
 0x411   : > { %v614_v11 = vsel %vm379_vm3, %v609_v9, 0 }
 0x414   : > { %v602_v4 = vpop.xlane.xlu0 %601 }
 0x415   : > { %1113 = vrcp.f32 %v602_v4 }
 0x418   : > { %v497_v5 = vpop.permute.xlu0 %496 }
 0x419   : > { %v502_v6 = vsel %vm379_vm3, %v497_v5, 0 }
 0x41a   : > { %v1112_v7 = vpop.eup %1111  ;;  %1009 = vmatpush3.bf16.msra.mxu0 %v502_v6 }
 0x41b   : > { %1020 = vmatprep.subr.bf16.mxu0 %v1195_v0  ;;  %v490_v8 = vmul.f32 %v1112_v7, %v1106_v56 }
 0x41d   : > { %v492_v10 = vpack.c.bf16 %v490_v8, %v490_v8  ;;  %v491_v18 = vadd.f32 %v490_v8, %v1321_v21 }
 0x41f   : > { %1011 = vmatmul.mubr.msk.bf16.vlgmr.msra.gmra.mxu0 %vm362_vm2, %v492_v10 }
 0x420   : > { %1021 = vmatpush3.bf16.msra.mxu0 %v614_v11  ;;  %1022 = vmatprep.mubr.msk.bf16.mxu0 %vm1196_vm0, %v1195_v0 }
 0x421   : > { %1032 = vmatprep.subr.bf16.mxu0 %v1195_v0 }
 0x422   : > { %v1114_v12 = vpop.eup %1113 }
 0x423   : > { %v605_v13 = vmul.f32 %v1114_v12, %v1108_v58 }
 0x425   : > { %v607_v14 = vpack.c.bf16 %v605_v13, %v605_v13  ;;  %v606_v22 = vadd.f32 %v605_v13, %v491_v18 }
 0x427   : > { %1023 = vmatmul.mubr.msk.bf16.vlgmr.msra.gmra.mxu0 %vm362_vm2, %v607_v14 }
 0x428   : > { %1034 = vmatprep.mubr.msk.bf16.mxu0 %vm1196_vm0, %v1195_v0 }
 0x441   : > { %v714_v15 = vpop.xlane.xlu1 %713 }
 0x442   : > { %1115 = vrcp.f32 %v714_v15 }
 0x445   : > { %v721_v16 = vpop.permute.xlu1 %720 }
 0x446   : > { %v726_v17 = vsel %vm379_vm3, %v721_v16, 0 }
 0x447   : > { %1033 = vmatpush3.bf16.msra.mxu0 %v726_v17 }
 0x44f   : > { %v1116_v19 = vpop.eup %1115 }
 0x450   : > { %v717_v20 = vmul.f32 %v1116_v19, %v1110_v1 }
 0x452   : > { %v719_v23 = vpack.c.bf16 %v717_v20, %v717_v20  ;;  %v718_v24 = vadd.f32 %v717_v20, %v606_v22 }
 0x454   : > { %1035 = vmatmul.mubr.msk.bf16.vlgmr.msra.gmra.mxu0 %vm362_vm2, %v719_v23  ;;  %v787_v25 = vmul.f32 0.25, %v718_v24 }
 0x456   : > { %788 = vst.msk [vmem:[%s276_s8] sm:$0xff] %vm362_vm2, %v787_v25 }
 0x4df   : > { %v538_v0 = vpop.f32.mrf.mxu0 }
 0x4e0   : > { %769 = vrot.lane.b32.xlu0 %v538_v0, %s1199_s22  ;;  %s1200_s22 = smov [#allocation2]  }
 0x4e1   : > { %v1012_v26 = vpop.f32.mrf.mxu0  ;;  %s1121_s30 = sshll.u32 %s1200_s22, 4  ;;  %s1122_s30 = int_to_ptr.vmem [resolvable:$false] %s1121_s30 }
 0x4e2   : > { %p1124_p3 = scmp.lt.s32.totalorder %s816_s10, %s1122_s30 }
 0x4e3   : > { %v541_v27 = vpop.f32.mrf.mxu0 }
 0x4e5   : > { %v1013_v21 = vpop.f32.mrf.mxu0 }
 0x4e7   : > { %v650_v28 = vpop.f32.mrf.mxu0 }
 0x4e8   : > { %773 = vrot.lane.b32.xlu1 %v650_v28, %s1198_s21  ;;  %s1123_s21 = scalar_lea.vmem %s1122_s30, 256 }
 0x4e9   : > { %v1024_v29 = vpop.f32.mrf.mxu0  ;;  %p1125_p5 = scmp.lt.s32.totalorder %s1123_s21, %s1117_s26 }
 0x4eb   : > { %v653_v30 = vpop.f32.mrf.mxu0  ;;  %p1126_p6 = por %p1125_p5, %p1124_p3 }
 0x4ed   : > { %v1025_v32 = vpop.f32.mrf.mxu0  ;;  %p1127_p7 = pnand %p1126_p6, %p1120_p2 }
 0x4ef   : > { %1130 = shalt.err (!%p1127_p7)
}
 0x4f0   : > { %s1131_s5 = scalar_lea.hbm %s813_s13, 128  ;;  %s1135_s7 = scalar_lea.hbm %s1420_s4, 256 }
 0x4f1   : > { %p1132_p9 = scmp.ne.s32.totalorder %s813_s13, %s1131_s5  ;;  %p1136_p12 = scmp.lt.s32.totalorder %s813_s13, %s1420_s4 }
 0x4f2   : > { %p1137_p13 = scmp.lt.s32.totalorder %s1135_s7, %s1131_s5 }
 0x4f3   : > { %p1133_p10 = pnand %p1132_p9, %p1266_p4 }
 0x4f4   : > { %p1138_p0 = por %p1137_p13, %p1136_p12 }
 0x4f5   : > { %p1134_p11 = pneg %p1133_p10 }
 0x4f7   : > { %p1139_p1 = pnand %p1138_p0, %p1134_p11 }
 0x4f9   : > { %1142 = shalt.err (!%p1139_p1)
}
 0x4fa   : > { %1038 = dma.vmem_to_hbm [thread:$0]  (%p1266_p4), %s816_s10, 128, %s813_s13, %s798_s24   ;;  %vm781_vm4 = vcmask 523264   ;;  %vm783_vm5 = vcmask 785408  }
 0x4fb   : > { %p305_p2 = scmp.lt.s32.totalorder %s1185_s18, 1 }
 0x4fd   : > { %s1435_s18 = smov (!%p305_p2, %s1185_s18), 1 }
 0x4fe   : > { %s958_s11 = sshll.u32 %s1435_s18, 2 }
 0x4ff   : > { %s310_s12 = scalar_lea.vmem %s1419_s3, %s958_s11 }
 0x514   : > { %v762_v33 = vpop.f32.mrf.mxu0 }
 0x515   : > { %777 = vrot.lane.b32.xlu0 %v762_v33, %s1197_s14 }
 0x516   : > { %v1036_v34 = vpop.f32.mrf.mxu0 }
 0x518   : > { %v765_v35 = vpop.f32.mrf.mxu0 }
 0x51a   : > { %v1037_v36 = vpop.f32.mrf.mxu0 }
 0x552   : > { %v770_v37 = vpop.permute.xlu0 %769 }
 0x553   : > { %v780_v39 = vsel %vm315_vm1, %v1340_v31, %v770_v37 }
 0x55a   : > { %v774_v38 = vpop.permute.xlu1 %773 }
 0x55b   : > { %v782_v40 = vsel %vm781_vm4, %v780_v39, %v774_v38 }
 0x587   : > { %v778_v41 = vpop.permute.xlu0 %777 }
 0x588   : > { %v784_v42 = vsel %vm783_vm5, %v782_v40, %v778_v41 }
 0x589   : > { %v785_v43 = vpack.c.bf16 %v784_v42, %v784_v42 }
 0x58b   : > { %786 = vst [vmem:[%s310_s12] sm:$0xf] %v785_v43 }
 0x58c PF: > { %p1044_p4 = scmp.ge.s32.totalorder %s1193_s20, 2  ;;  %s838_s14 = sand.u32 1, %s1173_s15  }
 0x58d   : > { %s839_s18 = scalar_lea.sflag [#allocation3], %s838_s14 }
 0x58e   : > { %p1041_p3 = pnand %p1044_p4, %p1273_p8 }
 0x590   : > { %p1042_p5 = pneg %p1041_p3 }
 0x592   : > { %1168 = dma.done.wait (%p1042_p5), %s839_s18, 128  }
 0x593   : > { %1170 = vsyncadd (%p1042_p5), %s839_s18, 4294967168  ;;  %s18_s20 = sadd.s32 1, %s1193_s20   ;;  %s1423_s15 = smov %s1177_s16 }
 0x594   : > { %p15_p6 = scmp.ge.s32.totalorder %s18_s20, 4   ;;  %s1424_s16 = smov %s1181_s17 }
 0x595   : > { %s1425_s17 = smov %s1279_s28  ;;  %s1426_s18 = smov %s1189_s19 }
 0x596   : > { %s1427_s19 = smov %s1429_s23  ;;  %17 = sbr.rel (!%p15_p6) target bundleno = 4 (0x4), region = 85 }
 0x59b   :  { %844 = vsyncpa [#allocation3], 1 }
 0x59c   :  { %846 = vsyncpa [#allocation3 + $0x1], 1 }

</bundles_post_ra>
